<compile_context>
chip_gen: v6e
topology: v6e:2x2x1
jax: 0.10.0
libtpu: 0.0.40
codegen_flags: <defaults>
</compile_context>

<pallas_src>
import jax
import jax.numpy as jnp
from jax.experimental import pallas as pl
from jax.experimental.pallas import tpu as pltpu


def _round_up(x, m):
    return (x + m - 1) // m * m


def _lsthm_kernel(x_ref, h_ref, z_ref, w_ref, u_ref, v_ref, b_ref, ctm_ref,
                  ct_ref, ht_ref):
    """One batch tile of the LSTHM cell update.

    sums = x@W + htm@U + ztm@V + (bW+bU+bV)   -- bf16 operands, f32 MXU accum
    f,i,o = sigmoid(gates); ch = tanh(gate)
    c_t   = f*ctm + i*ch ;  h_t = tanh(c_t)*o
    """
    cell = ct_ref.shape[-1]

    sums = jnp.dot(x_ref[...], w_ref[...], preferred_element_type=jnp.float32)
    sums = sums + jnp.dot(h_ref[...], u_ref[...],
                          preferred_element_type=jnp.float32)
    sums = sums + jnp.dot(z_ref[...], v_ref[...],
                          preferred_element_type=jnp.float32)
    sums = sums + b_ref[...]                       # f32 bias add (exact)

    def _sigmoid(t):
        # sigmoid(x) == 0.5*(tanh(x/2)+1): one EUP op instead of exp+divide.
        return 0.5 * (jnp.tanh(0.5 * t) + 1.0)

    f_t = _sigmoid(sums[:, 0 * cell:1 * cell])
    i_t = _sigmoid(sums[:, 1 * cell:2 * cell])
    o_t = _sigmoid(sums[:, 2 * cell:3 * cell])
    ch_t = jnp.tanh(sums[:, 3 * cell:4 * cell])

    c_t = f_t * ctm_ref[...] + i_t * ch_t
    h_t = jnp.tanh(c_t) * o_t

    ct_ref[...] = c_t.astype(ct_ref.dtype)
    ht_ref[...] = h_t.astype(ht_ref.dtype)


def lsthm_forward(x, ctm, htm, ztm, Wt, bW, Ut, bU, Vt, bV):
    """Pads/packs params and launches the fused Pallas kernel.

    Weight args are already transposed: Wt (in, 4*cell), Ut (cell, 4*cell),
    Vt (hybrid_in, 4*cell); biases are (4*cell,).
    """
    B, in_size = x.shape
    cell = ctm.shape[-1]
    hyb = ztm.shape[-1]
    n_gate = 4 * cell

    # Column layout: natural contiguous [f|i|o|ch], padded only so the TOTAL
    # width is a lane multiple (no per-gate 128 padding -> no 4x blow-up at
    # small cell; still perfectly aligned when cell % 128 == 0).
    N_p = _round_up(n_gate, 128)
    # Per-segment K padded to bf16 sublane packing (16 rows).
    in_p = _round_up(in_size, 16)
    cl_p = _round_up(cell, 16)
    hy_p = _round_up(hyb, 16)

    def _pad_w(w, kp):
        k, n = w.shape
        return jnp.pad(w, ((0, kp - k), (0, N_p - n))).astype(jnp.bfloat16)

    W_p = _pad_w(Wt, in_p)
    U_p = _pad_w(Ut, cl_p)
    V_p = _pad_w(Vt, hy_p)
    b_p = jnp.pad((bW + bU + bV).reshape(1, n_gate),
                  ((0, 0), (0, N_p - n_gate))).astype(jnp.float32)

    # --- batch tiling ------------------------------------------------------
    # bf16 LHS packs 16 rows/sublane-pair -> tile rows are a multiple of 16.
    # 256-row tiles fill the 2x256^2 MXU on v6e/v7x and halve per-step
    # overhead for big batches.
    bt = 256 if B > 256 else _round_up(max(B, 1), 16)

    # --- VMEM accounting (2x buffers for pipelined tiles, 1x residents) ----
    resident_bytes = (2 * (in_p + cl_p + hy_p) * N_p     # bf16 weights, Buffered(1)
                      + 8 * N_p * 4)                     # f32 bias row (padded sublanes)

    def _tile_bytes(bt_):
        act = 2 * bt_ * (in_p + cl_p + hy_p)             # bf16 x/htm/ztm tiles
        state = 4 * bt_ * cell                           # f32 ctm tile
        outs = 2 * 4 * bt_ * cell                        # f32 c_t, h_t tiles
        return act + state + outs

    try:
        vmem_cap = int(getattr(pltpu.get_tpu_info(), "vmem_capacity_bytes",
                               64 * 1024 * 1024))
    except Exception:
        vmem_cap = 64 * 1024 * 1024                      # conservative (v7x per-TC)
    vmem_budget = int(0.75 * vmem_cap)                   # ~25% headroom

    while bt > 16 and resident_bytes + 2 * _tile_bytes(bt) > vmem_budget:
        bt = max(16, _round_up(bt // 2, 16))

    B_p = _round_up(B, bt)
    grid = (B_p // bt,)

    vmem_need = resident_bytes + 2 * _tile_bytes(bt)
    vmem_limit = min(vmem_budget, max(16 * 1024 * 1024, int(1.5 * vmem_need)))
    vmem_limit = max(vmem_limit, vmem_need)

    # --- pad activations (batch rows + per-segment K only; bf16 cast) ------
    x_p = jnp.pad(x, ((0, B_p - B), (0, in_p - in_size))).astype(jnp.bfloat16)
    h_p = jnp.pad(htm, ((0, B_p - B), (0, cl_p - cell))).astype(jnp.bfloat16)
    z_p = jnp.pad(ztm, ((0, B_p - B), (0, hy_p - hyb))).astype(jnp.bfloat16)
    c_p = jnp.pad(ctm, ((0, B_p - B), (0, 0))).astype(jnp.float32)

    # --- advisory cost estimate --------------------------------------------
    K_tot = in_p + cl_p + hy_p
    flops = 2 * B_p * K_tot * N_p + 10 * B_p * cell
    transcendentals = 5 * B_p * cell
    bytes_accessed = (2 * B_p * K_tot + 2 * K_tot * N_p + 4 * N_p
                      + 4 * B_p * cell * 3)
    cost = pl.CostEstimate(flops=int(flops),
                           transcendentals=int(transcendentals),
                           bytes_accessed=int(bytes_accessed))

    compiler_params = pltpu.CompilerParams(
        dimension_semantics=("parallel",),
        vmem_limit_bytes=int(vmem_limit))

    resident = pl.Buffered(1)   # constant index_map -> a 2nd buffer is waste

    c_t, h_t = pl.pallas_call(
        _lsthm_kernel,
        out_shape=(
            jax.ShapeDtypeStruct((B_p, cell), jnp.float32),
            jax.ShapeDtypeStruct((B_p, cell), jnp.float32),
        ),
        grid=grid,
        in_specs=[
            pl.BlockSpec((bt, in_p), lambda i: (i, 0)),                       # x tile
            pl.BlockSpec((bt, cl_p), lambda i: (i, 0)),                       # htm tile
            pl.BlockSpec((bt, hy_p), lambda i: (i, 0)),                       # ztm tile
            pl.BlockSpec((in_p, N_p), lambda i: (0, 0), pipeline_mode=resident),  # W
            pl.BlockSpec((cl_p, N_p), lambda i: (0, 0), pipeline_mode=resident),  # U
            pl.BlockSpec((hy_p, N_p), lambda i: (0, 0), pipeline_mode=resident),  # V
            pl.BlockSpec((1, N_p), lambda i: (0, 0), pipeline_mode=resident),     # bias
            pl.BlockSpec((bt, cell), lambda i: (i, 0)),                       # ctm tile
        ],
        out_specs=(
            pl.BlockSpec((bt, cell), lambda i: (i, 0)),
            pl.BlockSpec((bt, cell), lambda i: (i, 0)),
        ),
        compiler_params=compiler_params,
        cost_estimate=cost,
    )(x_p, h_p, z_p, W_p, U_p, V_p, b_p, c_p)

    if B_p != B:                 # no column padding on outputs; trim rows only
        c_t = c_t[:B]
        h_t = h_t[:B]
    return c_t, h_t


def lsthm_reference(x, ctm, htm, ztm, Wt, bW, Ut, bU, Vt, bV):
    """Pure-JAX f32 reference matching the PyTorch forward semantics."""
    cell = ctm.shape[-1]
    sums = x @ Wt + bW + htm @ Ut + bU + ztm @ Vt + bV
    f_t = jax.nn.sigmoid(sums[:, :cell])
    i_t = jax.nn.sigmoid(sums[:, cell:2 * cell])
    o_t = jax.nn.sigmoid(sums[:, 2 * cell:3 * cell])
    ch_t = jnp.tanh(sums[:, 3 * cell:])
    c_t = f_t * ctm + i_t * ch_t
    h_t = jnp.tanh(c_t) * o_t
    return c_t, h_t


def _init_linear(key, in_features, out_features):
    """nn.Linear-style init U(-1/sqrt(fan_in), +1/sqrt(fan_in)); weight
    returned already transposed to (in_features, out_features)."""
    kw, kb = jax.random.split(key)
    bound = 1.0 / jnp.sqrt(jnp.asarray(in_features, jnp.float32))
    w_t = jax.random.uniform(kw, (in_features, out_features), jnp.float32,
                             minval=-bound, maxval=bound)
    b = jax.random.uniform(kb, (out_features,), jnp.float32,
                           minval=-bound, maxval=bound)
    return w_t, b


if __name__ == "__main__":
    # Small, LSTHM-consistent shapes.
    batch = 4
    cell_size = 32
    in_size = 16
    hybrid_in_size = 24

    key = jax.random.PRNGKey(0)
    (k_x, k_c, k_h, k_z, k_w, k_u, k_v) = jax.random.split(key, 7)

    x = jax.random.normal(k_x, (batch, in_size), jnp.float32)
    ctm = jax.random.normal(k_c, (batch, cell_size), jnp.float32)
    htm = jax.random.normal(k_h, (batch, cell_size), jnp.float32)
    ztm = jax.random.normal(k_z, (batch, hybrid_in_size), jnp.float32)

    Wt, bW = _init_linear(k_w, in_size, 4 * cell_size)
    Ut, bU = _init_linear(k_u, cell_size, 4 * cell_size)
    Vt, bV = _init_linear(k_v, hybrid_in_size, 4 * cell_size)

    c_t, h_t = lsthm_forward(x, ctm, htm, ztm, Wt, bW, Ut, bU, Vt, bV)
    jax.block_until_ready((c_t, h_t))

    c_ref, h_ref = lsthm_reference(x, ctm, htm, ztm, Wt, bW, Ut, bU, Vt, bV)
    # Tolerance accounts for bf16 MXU operands (accumulation stays f32).
    assert jnp.allclose(c_t, c_ref, atol=5e-2, rtol=5e-2), "c_t mismatch"
    assert jnp.allclose(h_t, h_ref, atol=5e-2, rtol=5e-2), "h_t mismatch"

    print("KERNEL_OK")
</pallas_src>

<mosaic_0001>
module attributes {stable_mosaic.version = 11 : i64} {
  func.func @_lsthm_kernel(%arg0: i32, %arg1: memref<16x16xbf16, #tpu.memory_space<vmem>>, %arg2: memref<16x32xbf16, #tpu.memory_space<vmem>>, %arg3: memref<16x32xbf16, #tpu.memory_space<vmem>>, %arg4: memref<16x128xbf16, #tpu.memory_space<vmem>>, %arg5: memref<32x128xbf16, #tpu.memory_space<vmem>>, %arg6: memref<32x128xbf16, #tpu.memory_space<vmem>>, %arg7: memref<1x128xf32, #tpu.memory_space<vmem>>, %arg8: memref<16x32xf32, #tpu.memory_space<vmem>>, %arg9: memref<16x32xf32, #tpu.memory_space<vmem>>, %arg10: memref<16x32xf32, #tpu.memory_space<vmem>>) attributes {dimension_semantics = [#tpu.dimension_semantics<parallel>], iteration_bounds = array<i64: 1>, scalar_prefetch = 0 : i64, scratch_operands = 0 : i64, tpu.core_type = #tpu.core_type<tc>, window_params = [{transform_indices = @transform_0, window_bounds = array<i64: 16, 16>}, {transform_indices = @transform_1, window_bounds = array<i64: 16, 32>}, {transform_indices = @transform_2, window_bounds = array<i64: 16, 32>}, {pipeline_mode = #tpu.pipeline_mode<synchronous>, transform_indices = @transform_3, window_bounds = array<i64: 16, 128>}, {pipeline_mode = #tpu.pipeline_mode<synchronous>, transform_indices = @transform_4, window_bounds = array<i64: 32, 128>}, {pipeline_mode = #tpu.pipeline_mode<synchronous>, transform_indices = @transform_5, window_bounds = array<i64: 32, 128>}, {pipeline_mode = #tpu.pipeline_mode<synchronous>, transform_indices = @transform_6, window_bounds = array<i64: 1, 128>}, {transform_indices = @transform_7, window_bounds = array<i64: 16, 32>}, {transform_indices = @transform_8, window_bounds = array<i64: 16, 32>}, {transform_indices = @transform_9, window_bounds = array<i64: 16, 32>}]} {
    %c0 = arith.constant 0 : index
    %c0_0 = arith.constant 0 : index
    %0 = vector.load %arg1[%c0, %c0_0] : memref<16x16xbf16, #tpu.memory_space<vmem>>, vector<16x16xbf16>
    %c0_1 = arith.constant 0 : index
    %c0_2 = arith.constant 0 : index
    %1 = vector.load %arg4[%c0_1, %c0_2] : memref<16x128xbf16, #tpu.memory_space<vmem>>, vector<16x128xbf16>
    %cst = arith.constant dense<0.000000e+00> : vector<16x128xf32>
    %2 = tpu.matmul %0, %1, %cst {dimension_numbers = #tpu.dot_dimension_numbers<[1], [0], [0], [1], [0, 0, 1, 1], [], []>} : vector<16x16xbf16>, vector<16x128xbf16>, vector<16x128xf32> -> vector<16x128xf32>
    %c0_3 = arith.constant 0 : index
    %c0_4 = arith.constant 0 : index
    %3 = vector.load %arg2[%c0_3, %c0_4] : memref<16x32xbf16, #tpu.memory_space<vmem>>, vector<16x32xbf16>
    %c0_5 = arith.constant 0 : index
    %c0_6 = arith.constant 0 : index
    %4 = vector.load %arg5[%c0_5, %c0_6] : memref<32x128xbf16, #tpu.memory_space<vmem>>, vector<32x128xbf16>
    %cst_7 = arith.constant dense<0.000000e+00> : vector<16x128xf32>
    %5 = tpu.matmul %3, %4, %cst_7 {dimension_numbers = #tpu.dot_dimension_numbers<[1], [0], [0], [1], [0, 0, 1, 1], [], []>} : vector<16x32xbf16>, vector<32x128xbf16>, vector<16x128xf32> -> vector<16x128xf32>
    %6 = arith.addf %2, %5 : vector<16x128xf32>
    %c0_8 = arith.constant 0 : index
    %c0_9 = arith.constant 0 : index
    %7 = vector.load %arg3[%c0_8, %c0_9] : memref<16x32xbf16, #tpu.memory_space<vmem>>, vector<16x32xbf16>
    %c0_10 = arith.constant 0 : index
    %c0_11 = arith.constant 0 : index
    %8 = vector.load %arg6[%c0_10, %c0_11] : memref<32x128xbf16, #tpu.memory_space<vmem>>, vector<32x128xbf16>
    %cst_12 = arith.constant dense<0.000000e+00> : vector<16x128xf32>
    %9 = tpu.matmul %7, %8, %cst_12 {dimension_numbers = #tpu.dot_dimension_numbers<[1], [0], [0], [1], [0, 0, 1, 1], [], []>} : vector<16x32xbf16>, vector<32x128xbf16>, vector<16x128xf32> -> vector<16x128xf32>
    %10 = arith.addf %6, %9 : vector<16x128xf32>
    %c0_13 = arith.constant 0 : index
    %c0_14 = arith.constant 0 : index
    %11 = vector.load %arg7[%c0_13, %c0_14] : memref<1x128xf32, #tpu.memory_space<vmem>>, vector<1x128xf32>
    %12 = vector.broadcast %11 : vector<1x128xf32> to vector<16x128xf32>
    %13 = arith.addf %10, %12 : vector<16x128xf32>
    %14 = vector.extract_strided_slice %13 {offsets = [0, 0], sizes = [16, 32], strides = [1, 1]} : vector<16x128xf32> to vector<16x32xf32>
    %cst_15 = arith.constant 5.000000e-01 : f32
    %15 = vector.broadcast %cst_15 : f32 to vector<16x32xf32>
    %16 = arith.mulf %15, %14 : vector<16x32xf32>
    %17 = math.tanh %16 : vector<16x32xf32>
    %cst_16 = arith.constant 1.000000e+00 : f32
    %18 = vector.broadcast %cst_16 : f32 to vector<16x32xf32>
    %19 = arith.addf %17, %18 : vector<16x32xf32>
    %cst_17 = arith.constant 5.000000e-01 : f32
    %20 = vector.broadcast %cst_17 : f32 to vector<16x32xf32>
    %21 = arith.mulf %20, %19 : vector<16x32xf32>
    %22 = vector.extract_strided_slice %13 {offsets = [0, 32], sizes = [16, 32], strides = [1, 1]} : vector<16x128xf32> to vector<16x32xf32>
    %cst_18 = arith.constant 5.000000e-01 : f32
    %23 = vector.broadcast %cst_18 : f32 to vector<16x32xf32>
    %24 = arith.mulf %23, %22 : vector<16x32xf32>
    %25 = math.tanh %24 : vector<16x32xf32>
    %cst_19 = arith.constant 1.000000e+00 : f32
    %26 = vector.broadcast %cst_19 : f32 to vector<16x32xf32>
    %27 = arith.addf %25, %26 : vector<16x32xf32>
    %cst_20 = arith.constant 5.000000e-01 : f32
    %28 = vector.broadcast %cst_20 : f32 to vector<16x32xf32>
    %29 = arith.mulf %28, %27 : vector<16x32xf32>
    %30 = vector.extract_strided_slice %13 {offsets = [0, 64], sizes = [16, 32], strides = [1, 1]} : vector<16x128xf32> to vector<16x32xf32>
    %cst_21 = arith.constant 5.000000e-01 : f32
    %31 = vector.broadcast %cst_21 : f32 to vector<16x32xf32>
    %32 = arith.mulf %31, %30 : vector<16x32xf32>
    %33 = math.tanh %32 : vector<16x32xf32>
    %cst_22 = arith.constant 1.000000e+00 : f32
    %34 = vector.broadcast %cst_22 : f32 to vector<16x32xf32>
    %35 = arith.addf %33, %34 : vector<16x32xf32>
    %cst_23 = arith.constant 5.000000e-01 : f32
    %36 = vector.broadcast %cst_23 : f32 to vector<16x32xf32>
    %37 = arith.mulf %36, %35 : vector<16x32xf32>
    %38 = vector.extract_strided_slice %13 {offsets = [0, 96], sizes = [16, 32], strides = [1, 1]} : vector<16x128xf32> to vector<16x32xf32>
    %39 = math.tanh %38 : vector<16x32xf32>
    %c0_24 = arith.constant 0 : index
    %c0_25 = arith.constant 0 : index
    %40 = vector.load %arg8[%c0_24, %c0_25] : memref<16x32xf32, #tpu.memory_space<vmem>>, vector<16x32xf32>
    %41 = arith.mulf %21, %40 : vector<16x32xf32>
    %42 = arith.mulf %29, %39 : vector<16x32xf32>
    %43 = arith.addf %41, %42 : vector<16x32xf32>
    %44 = math.tanh %43 : vector<16x32xf32>
    %45 = arith.mulf %44, %37 : vector<16x32xf32>
    %c0_26 = arith.constant 0 : index
    %c0_27 = arith.constant 0 : index
    %46 = vector.load %arg9[%c0_26, %c0_27] : memref<16x32xf32, #tpu.memory_space<vmem>>, vector<16x32xf32>
    tpu.vector_store %arg9[%c0_26, %c0_27], %43 {strides = array<i32>} : memref<16x32xf32, #tpu.memory_space<vmem>>, vector<16x32xf32>,
    %c0_28 = arith.constant 0 : index
    %c0_29 = arith.constant 0 : index
    %47 = vector.load %arg10[%c0_28, %c0_29] : memref<16x32xf32, #tpu.memory_space<vmem>>, vector<16x32xf32>
    tpu.vector_store %arg10[%c0_28, %c0_29], %45 {strides = array<i32>} : memref<16x32xf32, #tpu.memory_space<vmem>>, vector<16x32xf32>,
    return
  }
  func.func @transform_0(%arg0: i32) -> (i32, i32) {
    %c0_i32 = arith.constant 0 : i32
    %c0_i32_0 = arith.constant 0 : i32
    return %arg0, %c0_i32 : i32, i32
  }
  func.func @transform_1(%arg0: i32) -> (i32, i32) {
    %c0_i32 = arith.constant 0 : i32
    %c0_i32_0 = arith.constant 0 : i32
    return %arg0, %c0_i32 : i32, i32
  }
  func.func @transform_2(%arg0: i32) -> (i32, i32) {
    %c0_i32 = arith.constant 0 : i32
    %c0_i32_0 = arith.constant 0 : i32
    return %arg0, %c0_i32 : i32, i32
  }
  func.func @transform_3(%arg0: i32) -> (i32, i32) {
    %c0_i32 = arith.constant 0 : i32
    %c0_i32_0 = arith.constant 0 : i32
    %c0_i32_1 = arith.constant 0 : i32
    return %c0_i32, %c0_i32_0 : i32, i32
  }
  func.func @transform_4(%arg0: i32) -> (i32, i32) {
    %c0_i32 = arith.constant 0 : i32
    %c0_i32_0 = arith.constant 0 : i32
    %c0_i32_1 = arith.constant 0 : i32
    return %c0_i32, %c0_i32_0 : i32, i32
  }
  func.func @transform_5(%arg0: i32) -> (i32, i32) {
    %c0_i32 = arith.constant 0 : i32
    %c0_i32_0 = arith.constant 0 : i32
    %c0_i32_1 = arith.constant 0 : i32
    return %c0_i32, %c0_i32_0 : i32, i32
  }
  func.func @transform_6(%arg0: i32) -> (i32, i32) {
    %c0_i32 = arith.constant 0 : i32
    %c0_i32_0 = arith.constant 0 : i32
    %c0_i32_1 = arith.constant 0 : i32
    return %c0_i32, %c0_i32_0 : i32, i32
  }
  func.func @transform_7(%arg0: i32) -> (i32, i32) {
    %c0_i32 = arith.constant 0 : i32
    %c0_i32_0 = arith.constant 0 : i32
    return %arg0, %c0_i32 : i32, i32
  }
  func.func @transform_8(%arg0: i32) -> (i32, i32) {
    %c0_i32 = arith.constant 0 : i32
    %c0_i32_0 = arith.constant 0 : i32
    return %arg0, %c0_i32 : i32, i32
  }
  func.func @transform_9(%arg0: i32) -> (i32, i32) {
    %c0_i32 = arith.constant 0 : i32
    %c0_i32_0 = arith.constant 0 : i32
    return %arg0, %c0_i32 : i32, i32
  }
}

</mosaic_0001>

<bundles_post_ra>
// kernel: tpu_custom_call.1
= control target key start
LH: loop header
LB: loop body
LE: loop exit
PB: predicated region body
PF: predicated region fallthrough
CT: control target
= control target key end

     0   :  { %15 = vsyncpa [#allocation3], 0  ;;  %s827_s0 = inlined_call_operand.hbm [shape: bf16[16,16], index: 0, kind: input, shape index: {}]   ;;  %s828_s1 = inlined_call_operand.hbm [shape: bf16[16,32], index: 1, kind: input, shape index: {}]   ;;  %s829_s2 = inlined_call_operand.hbm [shape: bf16[16,32], index: 2, kind: input, shape index: {}]   ;;  %s830_s3 = inlined_call_operand.hbm [shape: bf16[16,128], index: 3, kind: input, shape index: {}]   ;;  %s831_s4 = inlined_call_operand.hbm [shape: bf16[32,128], index: 4, kind: input, shape index: {}]   ;;  %s832_s5 = inlined_call_operand.hbm [shape: bf16[32,128], index: 5, kind: input, shape index: {}]   ;;  %s833_s6 = inlined_call_operand.vmem [shape: f32[1,128], index: 6, kind: input, shape index: {}]   ;;  %s834_s7 = inlined_call_operand.hbm [shape: f32[16,32], index: 7, kind: input, shape index: {}]   ;;  %s835_s8 = inlined_call_operand.hbm [shape: f32[16,32], index: 8, kind: output, shape index: {0}]   ;;  %s836_s9 = inlined_call_operand.hbm [shape: f32[16,32], index: 9, kind: output, shape index: {1}]  }
   0x1   :  { %16 = vsyncpa [#allocation6], 0 }
   0x2   :  { %17 = vsyncpa [#allocation9], 0 }
   0x3   :  { %18 = vsyncpa [#allocation12], 0 }
   0x4   :  { %19 = vsyncpa [#allocation4], 0 }
   0x5   :  { %20 = vsyncpa [#allocation16], 0  ;;  %s691_s30 = smov [#allocation5]   ;;  %s692_s11 = smov [#allocation8]  }
   0x6   :  { %s38_s10 = sshll.u32 %s691_s30, 4  ;;  %s62_s12 = sshll.u32 %s692_s11, 4  ;;  %s39_s10 = int_to_ptr.vmem [resolvable:$true] %s38_s10  ;;  %s63_s12 = int_to_ptr.vmem [resolvable:$true] %s62_s12 }
   0x7   :  { %s507_s13 = scalar_lea.vmem %s39_s10, 128  ;;  %p512_p1 = scmp.lt.s32.totalorder %s39_s10, %s39_s10 }
   0x8   :  { %p508_p0 = scmp.ne.s32.totalorder %s39_s10, %s507_s13  ;;  %p513_p2 = scmp.lt.s32.totalorder %s507_s13, %s507_s13 }
   0xa   :  { %p514_p3 = por %p513_p2, %p512_p1 }
   0xc   :  { %p515_p4 = pnand %p514_p3, %p508_p0 }
   0xe   :  { %518 = shalt.err (!%p515_p4)
}
   0xf   :  { %s693_s14 = smov 64   ;;  %s694_s15 = smov 4  }
  0x10   :  { %44 = dma.hbm_to_vmem [thread:$0]  %s828_s1, 128, %s39_s10, [#allocation6], %s693_s14, %s693_s14, %s694_s15  }
  0x11   :  { %s527_s18 = scalar_lea.vmem %s63_s12, 128  ;;  %p532_p6 = scmp.lt.s32.totalorder %s63_s12, %s63_s12 }
  0x12   :  { %p528_p5 = scmp.ne.s32.totalorder %s63_s12, %s527_s18  ;;  %p533_p7 = scmp.lt.s32.totalorder %s527_s18, %s527_s18 }
  0x14   :  { %p534_p8 = por %p533_p7, %p532_p6 }
  0x16   :  { %p535_p9 = pnand %p534_p8, %p528_p5 }
  0x18   :  { %538 = shalt.err (!%p535_p9)
}
  0x19   :  { %68 = dma.hbm_to_vmem [thread:$0]  %s830_s3, 128, %s63_s12, [#allocation9], %s693_s14, %s693_s14, %s694_s15  }
  0x1a   :  { %s695_s21 = smov [#allocation11]   ;;  %s696_s23 = smov [#allocation2]  }
  0x1b   :  { %s86_s22 = sshll.u32 %s695_s21, 4  ;;  %s26_s24 = sshll.u32 %s696_s23, 4  ;;  %s87_s22 = int_to_ptr.vmem [resolvable:$true] %s86_s22  ;;  %s27_s24 = int_to_ptr.vmem [resolvable:$true] %s26_s24 }
  0x1c   :  { %s547_s1 = scalar_lea.vmem %s87_s22, 256  ;;  %p552_p11 = scmp.lt.s32.totalorder %s87_s22, %s87_s22 }
  0x1d   :  { %p548_p10 = scmp.ne.s32.totalorder %s87_s22, %s547_s1  ;;  %p553_p12 = scmp.lt.s32.totalorder %s547_s1, %s547_s1 }
  0x1f   :  { %p554_p13 = por %p553_p12, %p552_p11 }
  0x21   :  { %p555_p0 = pnand %p554_p13, %p548_p10 }
  0x23   :  { %558 = shalt.err (!%p555_p0)
}
  0x24   :  { %92 = dma.hbm_to_vmem [thread:$0]  %s832_s5, 256, %s87_s22, [#allocation12], %s693_s14, %s693_s14, %s694_s15  }
  0x25   :  { %s567_s3 = scalar_lea.vmem %s27_s24, 128  ;;  %p572_p2 = scmp.lt.s32.totalorder %s27_s24, %s27_s24 }
  0x26   :  { %p568_p1 = scmp.ne.s32.totalorder %s27_s24, %s567_s3  ;;  %p573_p3 = scmp.lt.s32.totalorder %s567_s3, %s567_s3 }
  0x28   :  { %p574_p4 = por %p573_p3, %p572_p2 }
  0x2a   :  { %p575_p5 = pnand %p574_p4, %p568_p1 }
  0x2c   :  { %578 = shalt.err (!%p575_p5)
}
  0x2d   :  { %32 = dma.hbm_to_vmem [thread:$0]  %s827_s0, 128, %s27_s24, [#allocation3], %s693_s14, %s693_s14, %s694_s15  }
  0x2e   :  { %s697_s29 = smov [#allocation7]   ;;  %s698_s10 = smov [#allocation10]  }
  0x2f   :  { %s50_s30 = sshll.u32 %s697_s29, 4  ;;  %s74_s11 = sshll.u32 %s698_s10, 4  ;;  %s51_s30 = int_to_ptr.vmem [resolvable:$true] %s50_s30  ;;  %s75_s11 = int_to_ptr.vmem [resolvable:$true] %s74_s11 }
  0x30   :  { %s587_s5 = scalar_lea.vmem %s51_s30, 128  ;;  %p592_p7 = scmp.lt.s32.totalorder %s51_s30, %s51_s30 }
  0x31   :  { %p588_p6 = scmp.ne.s32.totalorder %s51_s30, %s587_s5  ;;  %p593_p8 = scmp.lt.s32.totalorder %s587_s5, %s587_s5 }
  0x33   :  { %p594_p9 = por %p593_p8, %p592_p7 }
  0x35   :  { %p595_p10 = pnand %p594_p9, %p588_p6 }
  0x37   :  { %598 = shalt.err (!%p595_p10)
}
  0x38   :  { %56 = dma.hbm_to_vmem [thread:$0]  %s829_s2, 128, %s51_s30, [#allocation6], %s693_s14, %s693_s14, %s694_s15  }
  0x39   :  { %s607_s0 = scalar_lea.vmem %s75_s11, 256  ;;  %p612_p12 = scmp.lt.s32.totalorder %s75_s11, %s75_s11 }
  0x3a   :  { %p608_p11 = scmp.ne.s32.totalorder %s75_s11, %s607_s0  ;;  %p613_p13 = scmp.lt.s32.totalorder %s607_s0, %s607_s0 }
  0x3c   :  { %p614_p0 = por %p613_p13, %p612_p12 }
  0x3e   :  { %p615_p1 = pnand %p614_p0, %p608_p11 }
  0x40   :  { %618 = shalt.err (!%p615_p1)
}
  0x41   :  { %80 = dma.hbm_to_vmem [thread:$0]  %s831_s4, 256, %s75_s11, [#allocation9], %s693_s14, %s693_s14, %s694_s15  }
  0x42   :  { %s699_s18 = smov [#allocation13]  }
  0x43   :  { %s100_s19 = sshll.u32 %s699_s18, 4  ;;  %s101_s19 = int_to_ptr.vmem [resolvable:$true] %s100_s19 }
  0x44   :  { %s627_s20 = scalar_lea.vmem %s101_s19, 256  ;;  %p632_p3 = scmp.lt.s32.totalorder %s101_s19, %s101_s19 }
  0x45   :  { %p628_p2 = scmp.ne.s32.totalorder %s101_s19, %s627_s20  ;;  %p633_p4 = scmp.lt.s32.totalorder %s627_s20, %s627_s20 }
  0x47   :  { %p634_p5 = por %p633_p4, %p632_p3 }
  0x49   :  { %p635_p6 = pnand %p634_p5, %p628_p2 }
  0x4b   :  { %638 = shalt.err (!%p635_p6)
}
  0x4c   :  { %s700_s2 = smov 128   ;;  %s701_s21 = smov 8  }
  0x4d   :  { %106 = dma.hbm_to_vmem [thread:$0]  %s834_s7, 256, %s101_s19, [#allocation12], %s700_s2, %s700_s2, %s701_s21  }
  0x4e   :  { %679 = dma.done.wait [#allocation3], 128  }
  0x4f   :  { %680 = vsyncadd [#allocation3], 4294967168 }
  0x50   :  { %681 = dma.done.wait [#allocation6], 256  }
  0x51   :  { %682 = vsyncadd [#allocation6], 4294967040 }
  0x52   :  { %683 = dma.done.wait [#allocation9], 384  }
  0x53   :  { %684 = vsyncadd [#allocation9], 4294966912 }
  0x54   :  { %685 = dma.done.wait [#allocation12], 512  }
  0x55   :  { %686 = vsyncadd [#allocation12], 4294966784  ;;  %v702_v0 = vmov 0.0   ;;  %vm703_vm0 = vmmov 0   ;;  %v479_v1 = vld [vmem:[#allocation10 + $0x8] sm:$0xff]   ;;  %v480_v2 = vld [vmem:[#allocation8] sm:$0xff]  }
  0x56   :  { %441 = vmatprep.subr.bf16.mxu0 %v702_v0  ;;  %449 = vmatprep.subr.bf16.mxu1 %v702_v0  ;;  %v481_v3 = vld [vmem:[#allocation2] sm:$0xff]   ;;  %vm212_vm1 = vcmask 130048   ;;  %v483_v5 = vld [vmem:[#allocation11 + $0x8] sm:$0xff]   ;;  %v484_v6 = vld [vmem:[#allocation5] sm:$0xff]   ;;  %vm156_vm2 = vcmask 261120   ;;  %s705_s15 = smov [#allocation14]  }
  0x57   :  { %451 = vmatprep.mubr.msk.bf16.mxu1 %vm703_vm0, %v702_v0  ;;  %445 = vmatprep.mubr.msk.bf16.mxu0 %vm703_vm0, %v702_v0  ;;  %v482_v4 = vld [vmem:[#allocation10] sm:$0xff]   ;;  %v485_v7 = vld [vmem:[#allocation11] sm:$0xff]   ;;  %v346_v45 = vld [vmem:[#allocation13 + $0x8] sm:$0xff]  ;;  %s390_s24 = sshll.u32 %s705_s15, 4  ;;  %s391_s24 = int_to_ptr.vmem [resolvable:$true] %s390_s24 }
  0x58   :  { %442 = vmatpush3.bf16.msra.mxu0 %v479_v1  ;;  %450 = vmatpush3.bf16.msra.mxu1 %v480_v2  ;;  %v486_v8 = vld [vmem:[#allocation7] sm:$0xff]   ;;  %v432_v18 = vld [vmem:[%s833_s6] ss:$0 sm:$0xff]  ;;  %s704_s6 = smov 96   ;;  %s639_s1 = scalar_lea.vmem %s391_s24, 256 }
  0x59   :  { %443 = vmatprep.subr.bf16.mxu0 %v702_v0  ;;  %455 = vmatprep.subr.bf16.mxu1 %v702_v0  ;;  %v345_v42 = vld [vmem:[#allocation13] sm:$0xff]  ;;  %p640_p7 = scmp.ne.s32.totalorder %s391_s24, %s639_s1  ;;  %p644_p8 = scmp.lt.s32.totalorder %s391_s24, %s391_s24 }
  0x5a   :  { %p645_p9 = scmp.lt.s32.totalorder %s639_s1, %s639_s1 }
  0x5b   :  { %452 = vmatmul.mubr.msk.bf16.vlgmr.msra.gmra.mxu1 %vm212_vm1, %v481_v3 }
  0x5c   :  { %444 = vmatpush3.bf16.msra.mxu0 %v482_v4  ;;  %456 = vmatpush3.bf16.msra.mxu1 %v483_v5  ;;  %p646_p10 = por %p645_p9, %p644_p8 }
  0x5d   :  { %459 = vmatprep.mubr.msk.bf16.mxu1 %vm703_vm0, %v702_v0  ;;  %457 = vmatprep.subr.bf16.mxu1 %v702_v0 }
  0x5e   :  { %p647_p11 = pnand %p646_p10, %p640_p7 }
  0x5f   :  { %446 = vmatmul.mubr.msk.bf16.vlgmr.msra.gmra.mxu0 %vm156_vm2, %v484_v6 }
  0x60   :  { %458 = vmatpush3.bf16.msra.mxu1 %v485_v7 }
  0x63   :  { %460 = vmatmul.mubr.msk.bf16.vlgmr.msra.gmra.mxu1 %vm156_vm2, %v486_v8 }
 0x11b   :  { %v250_v9 = vpop.f32.mrf.mxu1 }
 0x11d   :  { %v453_v10 = vpop.f32.mrf.mxu1 }
 0x11f   :  { %v194_v11 = vpop.f32.mrf.mxu0  ;;  %v253_v12 = vpop.f32.mrf.mxu1 }
 0x120   :  { %v251_v15 = vadd.f32 %v250_v9, %v194_v11 }
 0x121   :  { %v447_v13 = vpop.f32.mrf.mxu0  ;;  %v454_v14 = vpop.f32.mrf.mxu1 }
 0x123   :  { %v197_v16 = vpop.f32.mrf.mxu0  ;;  %v317_v17 = vpop.f32.mrf.mxu1 }
 0x124   :  { %v324_v19 = vadd.f32 %v317_v17, %v251_v15  ;;  %v254_v22 = vadd.f32 %v253_v12, %v197_v16 }
 0x125   :  { %v448_v20 = vpop.f32.mrf.mxu0  ;;  %v461_v21 = vpop.f32.mrf.mxu1 }
 0x126   :  { %v333_v23 = vadd.f32 %v432_v18, %v324_v19 }
 0x127   :  { %v320_v24 = vpop.f32.mrf.mxu1 }
 0x128   :  { %v335_v25 = vmul.f32 0.5, %v333_v23  ;;  %v325_v26 = vadd.f32 %v320_v24, %v254_v22  ;;  %487 = vtanh.f32 %v333_v23 }
 0x129   :  { %v462_v27 = vpop.f32.mrf.mxu1 }
 0x12a   :  { %489 = vtanh.f32 %v335_v25  ;;  %v334_v28 = vadd.f32 %v432_v18, %v325_v26 }
 0x12c   :  { %491 = vtanh.f32 %v334_v28  ;;  %v336_v34 = vmul.f32 0.5, %v334_v28 }
 0x12e   :  { %493 = vtanh.f32 %v336_v34 }
 0x135   :  { %v488_v29 = vpop.eup %487 }
 0x136   :  { %351 = vrot.lane.b32.xlu0 %v488_v29, %s693_s14 }
 0x137   :  { %v490_v30 = vpop.eup %489 }
 0x138   :  { %v339_v31 = vadd.f32 1.0, %v490_v30 }
 0x139   :  { %v492_v32 = vpop.eup %491 }
 0x13a   :  { %353 = vrot.lane.b32.xlu0 %v492_v32, %s693_s14  ;;  %v341_v33 = vmul.f32 0.5, %v339_v31 }
 0x13b   :  { %v494_v35 = vpop.eup %493 }
 0x13c   :  { %v340_v36 = vadd.f32 1.0, %v494_v35  ;;  %v347_v43 = vmul.f32 %v345_v42, %v341_v33 }
 0x13e   :  { %373 = vrot.lane.b32.xlu0 %v341_v33, %s693_s14  ;;  %v342_v39 = vmul.f32 0.5, %v340_v36 }
 0x140   :  { %v348_v47 = vmul.f32 %v346_v45, %v342_v39 }
 0x1a8   :  { %v352_v37 = vpop.permute.xlu0 %351 }
 0x1a9   :  { %v357_v38 = vmul.f32 %v352_v37, %v341_v33 }
 0x1ab   :  { %361 = vrot.lane.b32.xlu1 %v357_v38, %s704_s6 }
 0x1ac   :  { %v354_v40 = vpop.permute.xlu0 %353 }
 0x1ad   :  { %v358_v41 = vmul.f32 %v354_v40, %v342_v39 }
 0x1af   :  { %363 = vrot.lane.b32.xlu1 %v358_v41, %s704_s6 }
 0x1b3   :  { %375 = vrot.lane.b32.xlu1 %v342_v39, %s693_s14 }
 0x21d   :  { %v362_v44 = vpop.permute.xlu1 %361 }
 0x21e   :  { %v367_v46 = vadd.f32 %v362_v44, %v347_v43 }
 0x220   :  { %495 = vtanh.f32 %v367_v46  ;;  %381 = vst.msk [vmem:[#allocation14] sm:$0xff] %vm156_vm2, %v367_v46 }
 0x221   :  { %v364_v48 = vpop.permute.xlu1 %363 }
 0x222   :  { %v368_v49 = vadd.f32 %v364_v48, %v348_v47 }
 0x224   :  { %497 = vtanh.f32 %v368_v49  ;;  %382 = vst.msk [vmem:[#allocation14 + $0x8] sm:$0xff] %vm156_vm2, %v368_v49 }
 0x225   :  { %650 = shalt.err (!%p647_p11)
}
 0x226   :  { %396 = dma.vmem_to_hbm [thread:$0]  %s391_s24, 256, %s835_s8, [#allocation4], %s700_s2, %s700_s2, %s701_s21   ;;  %v374_v51 = vpop.permute.xlu0 %373  ;;  %v376_v54 = vpop.permute.xlu1 %375 }
 0x227   :  { %s706_s26 = smov [#allocation15]  }
 0x228   :  { %s402_s3 = sshll.u32 %s706_s26, 4  ;;  %s403_s3 = int_to_ptr.vmem [resolvable:$true] %s402_s3 }
 0x229   :  { %s659_s27 = scalar_lea.vmem %s403_s3, 256  ;;  %p664_p13 = scmp.lt.s32.totalorder %s403_s3, %s403_s3 }
 0x22a   :  { %p660_p12 = scmp.ne.s32.totalorder %s403_s3, %s659_s27  ;;  %p665_p0 = scmp.lt.s32.totalorder %s659_s27, %s659_s27 }
 0x22c   :  { %p666_p1 = por %p665_p0, %p664_p13 }
 0x22d   :  { %v496_v50 = vpop.eup %495 }
 0x22e   :  { %v379_v52 = vmul.f32 %v496_v50, %v374_v51  ;;  %p667_p2 = pnand %p666_p1, %p660_p12 }
 0x230   :  { %383 = vst.msk [vmem:[#allocation15] sm:$0xff] %vm156_vm2, %v379_v52 }
 0x231   :  { %v498_v53 = vpop.eup %497 }
 0x232   :  { %v380_v55 = vmul.f32 %v498_v53, %v376_v54 }
 0x234   :  { %384 = vst.msk [vmem:[#allocation15 + $0x8] sm:$0xff] %vm156_vm2, %v380_v55 }
 0x235   :  { %670 = shalt.err (!%p667_p2)
}
 0x236   :  { %408 = dma.vmem_to_hbm [thread:$0]  %s403_s3, 256, %s836_s9, [#allocation16], %s700_s2, %s700_s2, %s701_s21  }
 0x237   :  { %687 = dma.done.wait [#allocation4], 256  }
 0x238   :  { %688 = vsyncadd [#allocation4], 4294967040 }
 0x239   :  { %689 = dma.done.wait [#allocation16], 256  }
 0x23a   :  { %690 = vsyncadd [#allocation16], 4294967040 }
 0x23b   :  { %415 = vsyncpa [#allocation3], 1 }
 0x23c   :  { %416 = vsyncpa [#allocation6], 1 }
 0x23d   :  { %417 = vsyncpa [#allocation9], 1 }
 0x23e   :  { %418 = vsyncpa [#allocation12], 1 }
 0x23f   :  { %419 = vsyncpa [#allocation4], 1 }
 0x240   :  { %420 = vsyncpa [#allocation16], 1 }

</bundles_post_ra>
